<compile_context>
chip_gen: v5e
topology: v5e:2x2
jax: 0.10.0
libtpu: 0.0.40
codegen_flags: <defaults>
</compile_context>

<pallas_src>
import jax
import jax.numpy as jnp
from jax.experimental import pallas as pl
from jax.experimental.pallas import tpu as pltpu

EPS = 1e-5


def _round_up(x, m):
    return (x + m - 1) // m * m


def prenorm_linear_kernel(x_ref, gamma_ref, beta_ref, w_ref, b_ref, o_ref):
    # x_ref: (tm, D) row tile; gamma/beta: (1, D); w: (D, tn); b: (1, tn)
    x = x_ref[...].astype(jnp.float32)
    d = x.shape[-1]
    inv_d = jnp.float32(1.0 / d)

    # Single-pass LayerNorm statistics: one sweep produces sum and sum-of-squares.
    s1 = jnp.sum(x, axis=-1, keepdims=True)
    s2 = jnp.sum(x * x, axis=-1, keepdims=True)
    mean = s1 * inv_d
    var = jnp.maximum(s2 * inv_d - mean * mean, 0.0)   # guard rounding-negative var
    r = jax.lax.rsqrt(var + EPS)                       # (tm, 1), torch eps placement
    mr = mean * r                                      # (tm, 1)

    gamma = gamma_ref[...].astype(jnp.float32)         # (1, D)
    beta = beta_ref[...].astype(jnp.float32)           # (1, D)
    # (x - mean) * r * gamma + beta, as a short per-row-scale / per-col-affine chain.
    normed = (x * r - mr) * gamma + beta

    # fn = Linear.  Feed the MXU in the weight's dtype (bf16 weights -> bf16
    # matmul on v6e/v7x), accumulate in f32.
    w = w_ref[...]
    out = jnp.dot(normed.astype(w.dtype), w, preferred_element_type=jnp.float32)
    out = out + b_ref[...].astype(jnp.float32)

    o_ref[...] = out.astype(o_ref.dtype)


def prenorm_linear(x, gamma, beta, w, b, *, tm=1024, tn=None, mxu_dtype=None):
    """x: (B, N, D) -> (B, N, D_out) implementing Linear(LayerNorm(x))."""
    B, N, D = x.shape
    D_out = w.shape[1]
    M = B * N

    # Optional MXU compute dtype (e.g. jnp.bfloat16 for f32 weights on v6e/v7x).
    mxu_dtype = w.dtype if mxu_dtype is None else jnp.dtype(mxu_dtype)
    w_mxu = w if w.dtype == mxu_dtype else w.astype(mxu_dtype)

    # ---- row tiling ---------------------------------------------------------
    # Big tiles amortize the ~0.35 us/step pipeline overhead; cap at ceil(M/2)
    # so the parallel axis has >= 2 tiles for v7x's two TensorCores.
    tm = max(8, min(tm, _round_up(M, 8)))
    tm = min(tm, max(16, _round_up(pl.cdiv(M, 2), 16)))
    tm = _round_up(tm, 8)

    # ---- output-feature tiling (guard for large D*D_out weights) ------------
    if tn is None:
        w_tile_cap = 8 << 20
        if D * D_out * w_mxu.dtype.itemsize <= w_tile_cap or D_out <= 128:
            tn = D_out
        else:
            tn = max(128, (w_tile_cap // (D * w_mxu.dtype.itemsize)) // 128 * 128)
            tn = min(tn, D_out)
    grid_n = pl.cdiv(D_out, tn)

    # ---- VMEM budgeting (explicit limit, generation-safe) -------------------
    def vmem_bytes(tm_):
        x_blk = tm_ * D * x.dtype.itemsize
        o_blk = tm_ * tn * x.dtype.itemsize
        w_blk = D * tn * w_mxu.dtype.itemsize
        ln_tmp = 3 * tm_ * D * 4                     # f32 upcast + live LN temporaries
        w_bufs = 1 if grid_n == 1 else 2
        return 2 * x_blk + 2 * o_blk + w_bufs * w_blk + ln_tmp + (2 << 20)

    VMEM_CAP = 48 << 20   # below v7x's 64 MiB physical VMEM; ample on v5e/v6e
    while vmem_bytes(tm) > VMEM_CAP and tm > 64:
        tm = max(64, _round_up(tm // 2, 8))
    vmem_limit = int(min(VMEM_CAP, max(32 << 20, int(vmem_bytes(tm) * 1.25))))
    grid_m = pl.cdiv(M, tm)

    # Flatten rows; no padding / slicing — the ragged tail is handled by the
    # masked partial-block write of the last grid step.
    x2 = x.reshape(M, D)
    gamma2 = gamma.reshape(1, D)
    beta2 = beta.reshape(1, D)
    b2 = b.reshape(1, D_out)

    cost = pl.CostEstimate(
        flops=2 * M * D * D_out + 7 * M * D,
        transcendentals=M,                        # one rsqrt per row
        bytes_accessed=(x2.size * x2.dtype.itemsize
                        + w_mxu.size * w_mxu.dtype.itemsize
                        + gamma2.size * gamma2.dtype.itemsize
                        + beta2.size * beta2.dtype.itemsize
                        + b2.size * b2.dtype.itemsize
                        + M * D_out * x.dtype.itemsize),
    )

    # Grid-invariant operands: single-buffer so their VMEM isn't doubled.
    def invariant(shape):
        return pl.BlockSpec(shape, lambda i, j: (0, 0), pipeline_mode=pl.Buffered(1))

    w_mode = pl.Buffered(1) if grid_n == 1 else None
    w_spec = pl.BlockSpec((D, tn), lambda i, j: (0, j), pipeline_mode=w_mode)
    b_spec = pl.BlockSpec((1, tn), lambda i, j: (0, j), pipeline_mode=w_mode)

    out2 = pl.pallas_call(
        prenorm_linear_kernel,
        out_shape=jax.ShapeDtypeStruct((M, D_out), x.dtype),
        grid_spec=pltpu.PrefetchScalarGridSpec(
            num_scalar_prefetch=0,
            grid=(grid_m, grid_n),
            in_specs=[
                pl.BlockSpec((tm, D), lambda i, j: (i, 0)),   # x row tile (pipelined)
                invariant((1, D)),                             # gamma
                invariant((1, D)),                             # beta
                w_spec,                                        # W (D, tn)
                b_spec,                                        # bias (1, tn)
            ],
            out_specs=pl.BlockSpec((tm, tn), lambda i, j: (i, j)),
        ),
        compiler_params=pltpu.CompilerParams(
            dimension_semantics=("parallel", "arbitrary"),
            vmem_limit_bytes=vmem_limit),
        cost_estimate=cost,
    )(x2, gamma2, beta2, w_mxu, b2)

    return out2.reshape(B, N, D_out)


def prenorm_linear_ref(x, gamma, beta, w, b):
    x32 = x.astype(jnp.float32)
    mean = jnp.mean(x32, axis=-1, keepdims=True)
    var = jnp.mean((x32 - mean) ** 2, axis=-1, keepdims=True)
    normed = (x32 - mean) * jax.lax.rsqrt(var + EPS)
    normed = normed * gamma + beta
    return (normed @ w.astype(jnp.float32) + b).astype(x.dtype)


if __name__ == "__main__":
    B, N, D = 2, 8, 32      # small demo shape; real TransMIL uses D=512 (lane-dense)
    D_out = D

    key = jax.random.PRNGKey(0)
    kx, kg, kb, kw, kbo = jax.random.split(key, 5)

    x = jax.random.normal(kx, (B, N, D), dtype=jnp.float32)
    gamma = jnp.ones((D,), jnp.float32) + 0.1 * jax.random.normal(kg, (D,), jnp.float32)
    beta = 0.1 * jax.random.normal(kb, (D,), jnp.float32)
    w = jax.random.normal(kw, (D, D_out), jnp.float32) / jnp.sqrt(D)
    b = 0.1 * jax.random.normal(kbo, (D_out,), jnp.float32)

    # Evenly-divided case.
    out = jax.block_until_ready(prenorm_linear(x, gamma, beta, w, b))
    ref = prenorm_linear_ref(x, gamma, beta, w, b)
    assert out.shape == (B, N, D_out)
    assert jnp.allclose(out, ref, atol=1e-4, rtol=1e-4), "mismatch vs reference"

    # Ragged-rows case: M % tm != 0 exercises the pad-free masked tail path.
    N2 = 9
    x_ragged = jax.random.normal(kx, (B, N2, D), dtype=jnp.float32)
    out_r = jax.block_until_ready(prenorm_linear(x_ragged, gamma, beta, w, b, tm=8))
    ref_r = prenorm_linear_ref(x_ragged, gamma, beta, w, b)
    assert out_r.shape == (B, N2, D_out)
    assert jnp.allclose(out_r, ref_r, atol=1e-4, rtol=1e-4), "ragged mismatch vs reference"

    print("KERNEL_OK")
</pallas_src>

<mosaic_0001>
module attributes {stable_mosaic.version = 11 : i64} {
  func.func @prenorm_linear_kernel(%arg0: i32, %arg1: i32, %arg2: memref<16x32xf32, #tpu.memory_space<vmem>>, %arg3: memref<1x32xf32, #tpu.memory_space<vmem>>, %arg4: memref<1x32xf32, #tpu.memory_space<vmem>>, %arg5: memref<32x32xf32, #tpu.memory_space<vmem>>, %arg6: memref<1x32xf32, #tpu.memory_space<vmem>>, %arg7: memref<16x32xf32, #tpu.memory_space<vmem>>) attributes {dimension_semantics = [#tpu.dimension_semantics<parallel>, #tpu.dimension_semantics<arbitrary>], iteration_bounds = array<i64: 1, 1>, scalar_prefetch = 0 : i64, scratch_operands = 0 : i64, tpu.core_type = #tpu.core_type<tc>, window_params = [{transform_indices = @transform_0, window_bounds = array<i64: 16, 32>}, {pipeline_mode = #tpu.pipeline_mode<synchronous>, transform_indices = @transform_1, window_bounds = array<i64: 1, 32>}, {pipeline_mode = #tpu.pipeline_mode<synchronous>, transform_indices = @transform_2, window_bounds = array<i64: 1, 32>}, {pipeline_mode = #tpu.pipeline_mode<synchronous>, transform_indices = @transform_3, window_bounds = array<i64: 32, 32>}, {pipeline_mode = #tpu.pipeline_mode<synchronous>, transform_indices = @transform_4, window_bounds = array<i64: 1, 32>}, {transform_indices = @transform_5, window_bounds = array<i64: 16, 32>}]} {
    %c0 = arith.constant 0 : index
    %c0_0 = arith.constant 0 : index
    %0 = vector.load %arg2[%c0, %c0_0] : memref<16x32xf32, #tpu.memory_space<vmem>>, vector<16x32xf32>
    %cst = arith.constant dense<0.000000e+00> : vector<16xf32>
    %1 = vector.multi_reduction <add>, %0, %cst [1] : vector<16x32xf32> to vector<16xf32>
    %2 = vector.shape_cast %1 : vector<16xf32> to vector<16x1xf32>
    %3 = arith.mulf %0, %0 : vector<16x32xf32>
    %cst_1 = arith.constant dense<0.000000e+00> : vector<16xf32>
    %4 = vector.multi_reduction <add>, %3, %cst_1 [1] : vector<16x32xf32> to vector<16xf32>
    %5 = vector.shape_cast %4 : vector<16xf32> to vector<16x1xf32>
    %cst_2 = arith.constant 3.125000e-02 : f32
    %6 = vector.broadcast %cst_2 : f32 to vector<16x1xf32>
    %7 = arith.mulf %2, %6 : vector<16x1xf32>
    %cst_3 = arith.constant 3.125000e-02 : f32
    %8 = vector.broadcast %cst_3 : f32 to vector<16x1xf32>
    %9 = arith.mulf %5, %8 : vector<16x1xf32>
    %10 = arith.mulf %7, %7 : vector<16x1xf32>
    %11 = arith.subf %9, %10 : vector<16x1xf32>
    %cst_4 = arith.constant 0.000000e+00 : f32
    %12 = vector.broadcast %cst_4 : f32 to vector<16x1xf32>
    %13 = arith.maximumf %11, %12 : vector<16x1xf32>
    %cst_5 = arith.constant 9.99999974E-6 : f32
    %14 = vector.broadcast %cst_5 : f32 to vector<16x1xf32>
    %15 = arith.addf %13, %14 : vector<16x1xf32>
    %16 = math.rsqrt %15 : vector<16x1xf32>
    %17 = arith.mulf %7, %16 : vector<16x1xf32>
    %c0_6 = arith.constant 0 : index
    %c0_7 = arith.constant 0 : index
    %18 = vector.load %arg3[%c0_6, %c0_7] : memref<1x32xf32, #tpu.memory_space<vmem>>, vector<1x32xf32>
    %c0_8 = arith.constant 0 : index
    %c0_9 = arith.constant 0 : index
    %19 = vector.load %arg4[%c0_8, %c0_9] : memref<1x32xf32, #tpu.memory_space<vmem>>, vector<1x32xf32>
    %20 = vector.broadcast %16 : vector<16x1xf32> to vector<16x32xf32>
    %21 = arith.mulf %0, %20 : vector<16x32xf32>
    %22 = vector.broadcast %17 : vector<16x1xf32> to vector<16x32xf32>
    %23 = arith.subf %21, %22 : vector<16x32xf32>
    %24 = vector.broadcast %18 : vector<1x32xf32> to vector<16x32xf32>
    %25 = arith.mulf %23, %24 : vector<16x32xf32>
    %26 = vector.broadcast %19 : vector<1x32xf32> to vector<16x32xf32>
    %27 = arith.addf %25, %26 : vector<16x32xf32>
    %c0_10 = arith.constant 0 : index
    %c0_11 = arith.constant 0 : index
    %28 = vector.load %arg5[%c0_10, %c0_11] : memref<32x32xf32, #tpu.memory_space<vmem>>, vector<32x32xf32>
    %cst_12 = arith.constant dense<0.000000e+00> : vector<16x32xf32>
    %29 = tpu.matmul %27, %28, %cst_12 {dimension_numbers = #tpu.dot_dimension_numbers<[1], [0], [0], [1], [0, 0, 1, 1], [], []>} : vector<16x32xf32>, vector<32x32xf32>, vector<16x32xf32> -> vector<16x32xf32>
    %c0_13 = arith.constant 0 : index
    %c0_14 = arith.constant 0 : index
    %30 = vector.load %arg6[%c0_13, %c0_14] : memref<1x32xf32, #tpu.memory_space<vmem>>, vector<1x32xf32>
    %31 = vector.broadcast %30 : vector<1x32xf32> to vector<16x32xf32>
    %32 = arith.addf %29, %31 : vector<16x32xf32>
    %c0_15 = arith.constant 0 : index
    %c0_16 = arith.constant 0 : index
    %33 = vector.load %arg7[%c0_15, %c0_16] : memref<16x32xf32, #tpu.memory_space<vmem>>, vector<16x32xf32>
    tpu.vector_store %arg7[%c0_15, %c0_16], %32 {strides = array<i32>} : memref<16x32xf32, #tpu.memory_space<vmem>>, vector<16x32xf32>,
    return
  }
  func.func @transform_0(%arg0: i32, %arg1: i32) -> (i32, i32) {
    %c0_i32 = arith.constant 0 : i32
    %c0_i32_0 = arith.constant 0 : i32
    return %arg0, %c0_i32 : i32, i32
  }
  func.func @transform_1(%arg0: i32, %arg1: i32) -> (i32, i32) {
    %c0_i32 = arith.constant 0 : i32
    %c0_i32_0 = arith.constant 0 : i32
    %c0_i32_1 = arith.constant 0 : i32
    return %c0_i32, %c0_i32_0 : i32, i32
  }
  func.func @transform_2(%arg0: i32, %arg1: i32) -> (i32, i32) {
    %c0_i32 = arith.constant 0 : i32
    %c0_i32_0 = arith.constant 0 : i32
    %c0_i32_1 = arith.constant 0 : i32
    return %c0_i32, %c0_i32_0 : i32, i32
  }
  func.func @transform_3(%arg0: i32, %arg1: i32) -> (i32, i32) {
    %c0_i32 = arith.constant 0 : i32
    %c0_i32_0 = arith.constant 0 : i32
    return %c0_i32, %arg1 : i32, i32
  }
  func.func @transform_4(%arg0: i32, %arg1: i32) -> (i32, i32) {
    %c0_i32 = arith.constant 0 : i32
    %c0_i32_0 = arith.constant 0 : i32
    return %c0_i32, %arg1 : i32, i32
  }
  func.func @transform_5(%arg0: i32, %arg1: i32) -> (i32, i32) {
    %c0_i32 = arith.constant 0 : i32
    return %arg0, %arg1 : i32, i32
  }
}

</mosaic_0001>

<bundles_post_ra>
// kernel: tpu_custom_call.1
= control target key start
LH: loop header
LB: loop body
LE: loop exit
PB: predicated region body
PF: predicated region fallthrough
CT: control target
= control target key end

     0   :  { %10 = vsyncpa [#allocation3], 0  ;;  %s390_s0 = inlined_call_operand.hbm [shape: f32[16,32], index: 0, kind: input, shape index: {}]   ;;  %s391_s1 = inlined_call_operand.hbm [shape: f32[1,32], index: 1, kind: input, shape index: {}]   ;;  %s392_s2 = inlined_call_operand.vmem [shape: f32[1,32], index: 2, kind: input, shape index: {}]   ;;  %s393_s3 = inlined_call_operand.hbm [shape: f32[32,32], index: 3, kind: input, shape index: {}]   ;;  %s394_s4 = inlined_call_operand.vmem [shape: f32[1,32], index: 4, kind: input, shape index: {}]   ;;  %s395_s5 = inlined_call_operand.hbm [shape: f32[16,32], index: 5, kind: output, shape index: {}]  }
   0x1   :  { %11 = vsyncpa [#allocation6], 0  ;;  %s31_s20 = sshll.u32 %s391_s1, 4  ;;  %s32_s20 = int_to_ptr.hbm [resolvable:$true] %s31_s20 }
   0x2   :  { %12 = vsyncpa [#allocation4], 0  ;;  %s313_s21 = smov [#allocation5]   ;;  %s17_s25 = sshll.u32 %s390_s0, 4  ;;  %s18_s25 = int_to_ptr.hbm [resolvable:$true] %s17_s25 }
   0x3   :  { %s33_s22 = sshll.u32 %s313_s21, 4  ;;  %s314_s26 = smov [#allocation2]   ;;  %s34_s22 = int_to_ptr.vmem [resolvable:$true] %s33_s22 }
   0x4   :  { %36 = dma.hbm_to_vmem [thread:$0]  %s32_s20, 16, %s34_s22, [#allocation6]  }
   0x5   :  { %s19_s27 = sshll.u32 %s314_s26, 4  ;;  %s315_s28 = smov 128   ;;  %s20_s27 = int_to_ptr.vmem [resolvable:$true] %s19_s27 }
   0x6   :  { %s316_s29 = smov 8   ;;  %s43_s6 = sshll.u32 %s393_s3, 4  ;;  %s44_s6 = int_to_ptr.hbm [resolvable:$true] %s43_s6 }
   0x7   :  { %25 = dma.hbm_to_vmem [thread:$0]  %s18_s25, 256, %s20_s27, [#allocation3], %s315_s28, %s315_s28, %s316_s29  }
   0x8   :  { %s317_s7 = smov [#allocation7]  }
   0x9   :  { %s45_s8 = sshll.u32 %s317_s7, 4  ;;  %s46_s8 = int_to_ptr.vmem [resolvable:$true] %s45_s8 }
   0xa   :  { %51 = dma.hbm_to_vmem [thread:$0]  %s44_s6, 512, %s46_s8, [#allocation6], %s315_s28, %s315_s28, %s316_s29  }
   0xb   :  { %307 = dma.done.wait [#allocation3], 256  }
   0xc   :  { %308 = vsyncadd [#allocation3], 4294967040 }
   0xd   :  { %309 = dma.done.wait [#allocation6], 528  }
   0xe   :  { %310 = vsyncadd [#allocation6], 4294966768  ;;  %vm68_vm0 = vcmask 261120   ;;  %v66_v0 = vld [vmem:[#allocation2] sm:$0xff]  ;;  %v365_v3 = vld [vmem:[#allocation2 + $0x8] sm:$0xff]  ;;  %s318_s10 = smov [#allocation8]  }
   0xf   :  { %v69_v1 = vsel %vm68_vm0, %v66_v0, 0.0  ;;  %v75_v2 = vmul.f32 %v66_v0, %v66_v0  ;;  %v76_v5 = vmul.f32 %v365_v3, %v365_v3  ;;  %v72_v6 = vsel %vm68_vm0, %v365_v3, 0.0  ;;  %v136_v8 = vld [vmem:[#allocation7 + $0x18] sm:$0xff]  ;;  %v135_v9 = vld [vmem:[#allocation7 + $0x10] sm:$0xff]  ;;  %v134_v12 = vld [vmem:[#allocation7 + $0x8] sm:$0xff]  ;;  %s176_s11 = sshll.u32 %s318_s10, 4  ;;  %s177_s11 = int_to_ptr.vmem [resolvable:$true] %s176_s11 }
  0x10   :  { %70 = vadd.xlane.f32.xlu0 %v69_v1  ;;  %159 = vmatpush.msra.mxu0 %v136_v8  ;;  %v133_v16 = vld [vmem:[#allocation7] sm:$0xff]  ;;  %v204_v40 = vld [vmem:[#allocation5] ss:$0 sm:$0xff]  ;;  %v205_v43 = vld [vmem:[%s392_s2] ss:$0 sm:$0xff]  ;;  %s178_s14 = sshll.u32 %s395_s5, 4  ;;  %s179_s14 = int_to_ptr.hbm [resolvable:$true] %s178_s14 }
  0x11   :  { %v77_v4 = vsel %vm68_vm0, %v75_v2, 0.0  ;;  %v80_v7 = vsel %vm68_vm0, %v76_v5, 0.0  ;;  %194 = vmatpush.msra.mxu1 %v136_v8  ;;  %v206_v54 = vld [vmem:[%s394_s4] ss:$0 sm:$0xff] }
  0x12   :  { %78 = vadd.xlane.f32.xlu1 %v77_v4  ;;  %160 = vmatpush.msra.mxu0 %v135_v9 }
  0x13   :  { %195 = vmatpush.msra.mxu1 %v135_v9 }
  0x14   :  { %161 = vmatpush.msra.mxu0 %v134_v12 }
  0x15   :  { %196 = vmatpush.msra.mxu1 %v134_v12 }
  0x16   :  { %162 = vmatpush.msra.mxu0 %v133_v16 }
  0x17   :  { %197 = vmatpush.msra.mxu1 %v133_v16 }
  0x18   :  { %73 = vadd.xlane.f32.xlu0 %v72_v6 }
  0x1a   :  { %81 = vadd.xlane.f32.xlu1 %v80_v7 }
  0x83   :  { %v71_v10 = vpop.xlane.xlu0 %70 }
  0x84   :  { %v83_v11 = vmul.f32 0.03125, %v71_v10 }
  0x85   :  { %v79_v13 = vpop.xlane.xlu1 %78 }
  0x86   :  { %v87_v14 = vmul.f32 %v83_v11, %v83_v11  ;;  %v85_v15 = vmul.f32 0.03125, %v79_v13 }
  0x88   :  { %v89_v17 = vsub.f32 %v85_v15, %v87_v14 }
  0x8a   :  { %v91_v18 = vmax.f32 %v89_v17, 0.0 }
  0x8b   :  { %v74_v19 = vpop.xlane.xlu0 %73 }
  0x8c   :  { %v93_v20 = vadd.f32 1e-05, %v91_v18  ;;  %v84_v21 = vmul.f32 0.03125, %v74_v19 }
  0x8d   :  { %v82_v22 = vpop.xlane.xlu1 %81 }
  0x8e   :  { %207 = vrsqrt.f32 %v93_v20  ;;  %v88_v23 = vmul.f32 %v84_v21, %v84_v21  ;;  %v86_v24 = vmul.f32 0.03125, %v82_v22  ;;  %vm101_vm2 = vweird.f32 %v93_v20 }
  0x90   :  { %v90_v25 = vsub.f32 %v86_v24, %v88_v23 }
  0x92   :  { %v92_v26 = vmax.f32 %v90_v25, 0.0 }
  0x94   :  { %v208_v27 = vpop.eup %207  ;;  %v94_v28 = vadd.f32 1e-05, %v92_v26 }
  0x95   :  { %v96_v29 = vmul.f32 %v208_v27, %v93_v20  ;;  %vm102_vm1 = vweird.f32 %v208_v27 }
  0x96   :  { %209 = vrsqrt.f32 %v94_v28  ;;  %vm103_vm3 = vmor %vm101_vm2, %vm102_vm1  ;;  %vm111_vm5 = vweird.f32 %v94_v28 }
  0x97   :  { %v97_v30 = vmul.f32 %v208_v27, %v96_v29 }
  0x99   :  { %v98_v31 = vmul.f32 0.5, %v97_v30 }
  0x9b   :  { %v99_v32 = vsub.f32 1.5, %v98_v31 }
  0x9c   :  { %v210_v33 = vpop.eup %209 }
  0x9d   :  { %v100_v34 = vmul.f32 %v208_v27, %v99_v32  ;;  %v106_v35 = vmul.f32 %v210_v33, %v94_v28  ;;  %vm112_vm4 = vweird.f32 %v210_v33 }
  0x9e   :  { %vm113_vm6 = vmor %vm111_vm5, %vm112_vm4 }
  0x9f   :  { %v107_v36 = vmul.f32 %v210_v33, %v106_v35  ;;  %v104_v37 = vsel %vm103_vm3, %v208_v27, %v100_v34 }
  0xa0   :  { %v115_v38 = vmul.f32 %v104_v37, %v83_v11  ;;  %v119_v39 = vmul.f32 %v104_v37, %v66_v0 }
  0xa1   :  { %v108_v41 = vmul.f32 0.5, %v107_v36 }
  0xa2   :  { %v121_v42 = vsub.f32 %v119_v39, %v115_v38 }
  0xa3   :  { %v109_v44 = vsub.f32 1.5, %v108_v41 }
  0xa4   :  { %v126_v45 = vmul.f32 %v204_v40, %v121_v42 }
  0xa5   :  { %v110_v46 = vmul.f32 %v210_v33, %v109_v44 }
  0xa6   :  { %v131_v47 = vadd.f32 %v205_v43, %v126_v45 }
  0xa7   :  { %v114_v48 = vsel %vm113_vm6, %v210_v33, %v110_v46 }
  0xa8   :  { %192 = vmatmul.msk.f32.vlgmr.msra.gmra.mxu0 %vm68_vm0, %v131_v47  ;;  %v116_v49 = vmul.f32 %v114_v48, %v84_v21  ;;  %v120_v50 = vmul.f32 %v114_v48, %v365_v3 }
  0xaa   :  { %v122_v51 = vsub.f32 %v120_v50, %v116_v49 }
  0xac   :  { %v127_v52 = vmul.f32 %v204_v40, %v122_v51 }
  0xae   :  { %v132_v53 = vadd.f32 %v205_v43, %v127_v52 }
  0xb0   :  { %193 = vmatmul.msk.f32.vlgmr.msra.gmra.mxu1 %vm68_vm0, %v132_v53 }
 0x125   :  { %v164_v55 = vpop.f32.mrf.mxu0 }
 0x126   :  { %v165_v56 = vadd.f32 %v206_v54, %v164_v55 }
 0x128   :  { %170 = vst.msk [vmem:[#allocation8] sm:$0xff] %vm68_vm0, %v165_v56 }
 0x12d   :  { %v167_v57 = vpop.f32.mrf.mxu1 }
 0x12e   :  { %v168_v58 = vadd.f32 %v206_v54, %v167_v57 }
 0x130   :  { %171 = vst.msk [vmem:[#allocation8 + $0x8] sm:$0xff] %vm68_vm0, %v168_v58 }
 0x131   :  { %184 = dma.vmem_to_hbm [thread:$0]  %s177_s11, 256, %s179_s14, [#allocation4], %s315_s28, %s315_s28, %s316_s29  }
 0x132   :  { %311 = dma.done.wait [#allocation4], 256  }
 0x133   :  { %312 = vsyncadd [#allocation4], 4294967040 }
 0x134   :  { %189 = vsyncpa [#allocation3], 1 }
 0x135   :  { %190 = vsyncpa [#allocation6], 1 }
 0x136   :  { %191 = vsyncpa [#allocation4], 1 }

</bundles_post_ra>
